<compile_context>
chip_gen: v7x
topology: tpu7x:2x2x1
jax: 0.10.0
libtpu: 0.0.40
codegen_flags: <defaults>
</compile_context>

<pallas_src>
import functools

import jax
import jax.numpy as jnp
from jax.experimental import pallas as pl
from jax.experimental.pallas import tpu as pltpu


# ---------------------------------------------------------------------------
# Pallas kernel: fused 3-layer GCN forward + mean pool + output linear
# ---------------------------------------------------------------------------
def _gnn_kernel(a_ref, x_ref, w_ref, b_ref, p_ref, wo_ref, bo_ref,
                out_ref, h_ref, acc_ref, pool_ref, *, tm, tk):
    l = pl.program_id(0)   # GCN layer          (sequential)
    i = pl.program_id(1)   # row tile of A_hat  (sequential: feeds resident H)
    k = pl.program_id(2)   # col tile of A_hat  (reduction axis)
    nl = pl.num_programs(0)
    ni = pl.num_programs(1)
    nk = pl.num_programs(2)

    # Very first grid step: seed resident H (slot 0) with the padded node
    # features and clear the pooling / output accumulators.
    @pl.when((l == 0) & (i == 0) & (k == 0))
    def _():
        h_ref[0] = x_ref[...]
        pool_ref[...] = jnp.zeros_like(pool_ref)
        out_ref[...] = jnp.zeros_like(out_ref)

    # Start of each A-column reduction: clear the row-tile accumulator.
    @pl.when(k == 0)
    def _():
        acc_ref[...] = jnp.zeros_like(acc_ref)

    # acc[i] += A[i, k] @ H_in[k]      (bf16 x bf16 -> f32 on the MXU)
    src = l % 2
    k0 = pl.multiple_of(k * tk, tk)
    h_in = h_ref[src, pl.ds(k0, tk), :]
    acc_ref[...] += jnp.dot(a_ref[...], h_in,
                            preferred_element_type=jnp.float32)

    # End of the reduction: apply this layer's weight / bias / relu and store
    # the finished row tile into the other H slot.
    @pl.when(k == nk - 1)
    def _():
        h_new = jnp.dot(acc_ref[...], w_ref[0],
                        preferred_element_type=jnp.float32)
        h_new = jnp.maximum(h_new + b_ref[0], 0.0)
        i0 = pl.multiple_of(i * tm, tm)
        h_ref[(l + 1) % 2, pl.ds(i0, tm), :] = h_new.astype(jnp.bfloat16)

        # Last GCN layer: fold this row tile into the mean-pool accumulator.
        @pl.when(l == nl - 1)
        def _():
            pool_ref[...] += jnp.dot(p_ref[...], h_new,
                                     preferred_element_type=jnp.float32)

        # Very last grid step: output Linear on the pooled graph features.
        @pl.when((l == nl - 1) & (i == ni - 1))
        def _():
            out_ref[...] = (jnp.dot(pool_ref[...], wo_ref[...],
                                    preferred_element_type=jnp.float32)
                            + bo_ref[...])


# ---------------------------------------------------------------------------
# Glue: normalized adjacency, pooling matrix, padding, pallas_call wrapper
# ---------------------------------------------------------------------------
def build_gcn_norm_adj(edge_index, num_nodes):
    """Dense A_hat = D^-1/2 (A + I) D^-1/2  (GCNConv normalization)."""
    src, dst = edge_index[0], edge_index[1]
    adj = jnp.zeros((num_nodes, num_nodes), jnp.float32)
    adj = adj.at[dst, src].set(1.0)                      # message j -> i
    adj = adj + jnp.eye(num_nodes, dtype=jnp.float32)    # add self-loops
    deg = adj.sum(axis=1)
    dinv = jnp.where(deg > 0, 1.0 / jnp.sqrt(deg), 0.0)
    return dinv[:, None] * adj * dinv[None, :]


def build_pool_matrix(batch, num_graphs):
    """P[g, i] = 1/count_g  if batch[i] == g else 0  (global_mean_pool)."""
    one_hot = (batch[None, :] == jnp.arange(num_graphs)[:, None]).astype(jnp.float32)
    counts = one_hot.sum(axis=1, keepdims=True)
    return one_hot / jnp.maximum(counts, 1.0)


def _round_up(v, m):
    return ((v + m - 1) // m) * m


def gnn_forward(x, edge_index, batch, params, num_graphs, *, tile=128):
    """Fused 3x GCNConv + global_mean_pool + Linear forward pass (eval mode)."""
    w1, b1, w2, b2, w3, b3, wo, bo = params
    n, in_dim = x.shape
    h1, h2, h3 = w1.shape[1], w2.shape[1], w3.shape[1]

    assert tile % 128 == 0, "tile must be a multiple of 128 (lane width)"
    # NOTE(v5e/v6e/v7x): `tile` sizes the streamed A_hat block; keep
    # 2 * tile^2 * 2 bytes (double-buffered bf16) well inside per-generation
    # VMEM (64 MiB/TC on v7x, 128 MiB on v5e/v6e).
    tm = tk = tile

    hw = _round_up(max(in_dim, h1, h2, h3, 128), 128)   # lane-dense hidden width
    out_w = 128                                          # lane-dense output width
    n_pad = _round_up(max(n, tile), tile)
    g_pad = _round_up(max(num_graphs, 8), 8)

    # Dense normalized graph operators (plain-JAX glue; zero-padding is inert:
    # padded A rows/cols and padded P cols are zero so they contribute nothing).
    a_hat = build_gcn_norm_adj(edge_index, n)            # [N, N] f32
    pool = build_pool_matrix(batch, num_graphs)          # [G, N] f32

    a_pad = jnp.zeros((n_pad, n_pad), jnp.bfloat16).at[:n, :n].set(
        a_hat.astype(jnp.bfloat16))
    x_pad = jnp.zeros((n_pad, hw), jnp.bfloat16).at[:n, :in_dim].set(
        x.astype(jnp.bfloat16))
    p_pad = jnp.zeros((g_pad, n_pad), jnp.float32).at[:num_graphs, :n].set(pool)

    def pad_w(w):
        return jnp.zeros((hw, hw), jnp.float32).at[:w.shape[0], :w.shape[1]].set(w)

    def pad_b(b):
        return jnp.zeros((1, hw), jnp.float32).at[:, :b.shape[1]].set(b)

    w_stack = jnp.stack([pad_w(w1), pad_w(w2), pad_w(w3)])           # [3, hw, hw]
    b_stack = jnp.stack([pad_b(b1), pad_b(b2), pad_b(b3)])           # [3, 1, hw]
    wo_pad = jnp.zeros((hw, out_w), jnp.float32).at[:h3, :1].set(wo)
    bo_pad = jnp.zeros((1, out_w), jnp.float32).at[:, :1].set(bo)

    grid = (3, n_pad // tm, n_pad // tk)

    # Explicit VMEM budget (review item): footprint + headroom, capped at the
    # smallest per-core VMEM (v7x: 64 MiB).
    est = (2 * tm * tk * 2             # A tile, bf16, double buffered
           + n_pad * hw * 2            # resident X (bf16)
           + 2 * n_pad * hw * 2        # resident H ping-pong scratch (bf16)
           + 2 * (hw * hw + hw) * 4    # W / b blocks (double buffered)
           + 2 * g_pad * tm * 4        # P row tile (double buffered)
           + (hw * out_w + out_w) * 4  # Wo / bo
           + tm * hw * 4               # f32 A@H accumulator
           + g_pad * hw * 4            # pooled accumulator
           + 2 * g_pad * out_w * 4)    # output block
    vmem_limit = int(min(2 * est + (4 << 20), 64 << 20))

    kernel = functools.partial(_gnn_kernel, tm=tm, tk=tk)

    out = pl.pallas_call(
        kernel,
        out_shape=jax.ShapeDtypeStruct((g_pad, out_w), jnp.float32),
        grid_spec=pltpu.PrefetchScalarGridSpec(
            num_scalar_prefetch=0,
            grid=grid,
            in_specs=[
                pl.BlockSpec((tm, tk), lambda l, i, k: (i, k)),        # A_hat tiles
                pl.BlockSpec((n_pad, hw), lambda l, i, k: (0, 0)),     # X (resident)
                pl.BlockSpec((1, hw, hw), lambda l, i, k: (l, 0, 0)),  # W_l
                pl.BlockSpec((1, 1, hw), lambda l, i, k: (l, 0, 0)),   # b_l
                pl.BlockSpec((g_pad, tm), lambda l, i, k: (0, i)),     # P row tile
                pl.BlockSpec((hw, out_w), lambda l, i, k: (0, 0)),     # Wo
                pl.BlockSpec((1, out_w), lambda l, i, k: (0, 0)),      # bo
            ],
            out_specs=pl.BlockSpec((g_pad, out_w), lambda l, i, k: (0, 0)),
            scratch_shapes=[
                pltpu.VMEM((2, n_pad, hw), jnp.bfloat16),   # resident H ping-pong
                pltpu.VMEM((tm, hw), jnp.float32),          # A@H accumulator
                pltpu.VMEM((g_pad, hw), jnp.float32),       # pooled accumulator
            ],
        ),
        compiler_params=pltpu.CompilerParams(
            # Row tiles feed the shared resident-H scratch across layers, so all
            # axes must stay sequential on one core.  (v7x dual-TC parallelism
            # needs the per-layer / block-sparse split noted in the TODO above.)
            dimension_semantics=("arbitrary", "arbitrary", "arbitrary"),
            vmem_limit_bytes=vmem_limit,
        ),
    )(a_pad, x_pad, w_stack, b_stack, p_pad, wo_pad, bo_pad)

    return out[:num_graphs, :1]


def gnn_reference(x, edge_index, batch, params, num_graphs):
    """Pure-JAX f32 reference for the same forward pass."""
    w1, b1, w2, b2, w3, b3, wo, bo = params
    a = build_gcn_norm_adj(edge_index, x.shape[0])
    p = build_pool_matrix(batch, num_graphs)
    h = jnp.maximum(a @ (x @ w1) + b1, 0.0)
    h = jnp.maximum(a @ (h @ w2) + b2, 0.0)
    h = jnp.maximum(a @ (h @ w3) + b3, 0.0)
    return (p @ h) @ wo + bo


def init_params(key, in_dim, h1, h2, h3):
    ks = jax.random.split(key, 4)

    def glorot(k, fan_in, fan_out):
        lim = jnp.sqrt(6.0 / (fan_in + fan_out))
        return jax.random.uniform(k, (fan_in, fan_out), jnp.float32, -lim, lim)

    w1 = glorot(ks[0], in_dim, h1)
    w2 = glorot(ks[1], h1, h2)
    w3 = glorot(ks[2], h2, h3)
    wo = glorot(ks[3], h3, 1)
    b1 = jnp.zeros((1, h1), jnp.float32)
    b2 = jnp.zeros((1, h2), jnp.float32)
    b3 = jnp.zeros((1, h3), jnp.float32)
    bo = jnp.zeros((1, 1), jnp.float32)
    return (w1, b1, w2, b2, w3, b3, wo, bo)


if __name__ == "__main__":
    key = jax.random.PRNGKey(0)
    k_x, k_p = jax.random.split(key)

    # Small synthetic batch: 2 molecules of 8 atoms each (16 nodes total),
    # 16 node descriptors (matches GCNConv(16, hidden_channels1)).
    num_nodes = 16
    num_graphs = 2
    in_dim, h1, h2, h3 = 16, 32, 32, 32

    x = jax.random.normal(k_x, (num_nodes, in_dim), jnp.float32)

    # Ring graph inside each molecule, edges given in both directions.
    src_list, dst_list = [], []
    for g in range(num_graphs):
        base = g * 8
        for i in range(8):
            a, b = base + i, base + (i + 1) % 8
            src_list += [a, b]
            dst_list += [b, a]
    edge_index = jnp.array([src_list, dst_list], dtype=jnp.int32)   # [2, E]
    batch = jnp.repeat(jnp.arange(num_graphs, dtype=jnp.int32), 8)  # [N]

    params = init_params(k_p, in_dim, h1, h2, h3)

    out = gnn_forward(x, edge_index, batch, params, num_graphs)
    jax.block_until_ready(out)

    ref = gnn_reference(x, edge_index, batch, params, num_graphs)
    err = float(jnp.max(jnp.abs(out - ref)))

    assert out.shape == (num_graphs, 1)
    assert out.dtype == jnp.float32
    assert bool(jnp.all(jnp.isfinite(out)))
    assert err < 1e-1, f"max abs error vs f32 reference: {err}"
    print("KERNEL_OK")
</pallas_src>

<mosaic_0001>
module attributes {stable_mosaic.version = 11 : i64} {
  func.func @_gnn_kernel(%arg0: i32, %arg1: i32, %arg2: i32, %arg3: memref<128x128xbf16, #tpu.memory_space<vmem>>, %arg4: memref<128x128xbf16, #tpu.memory_space<vmem>>, %arg5: memref<1x128x128xf32, #tpu.memory_space<vmem>>, %arg6: memref<1x1x128xf32, #tpu.memory_space<vmem>>, %arg7: memref<8x128xf32, #tpu.memory_space<vmem>>, %arg8: memref<128x128xf32, #tpu.memory_space<vmem>>, %arg9: memref<1x128xf32, #tpu.memory_space<vmem>>, %arg10: memref<8x128xf32, #tpu.memory_space<vmem>>, %arg11: memref<2x128x128xbf16, #tpu.memory_space<vmem>>, %arg12: memref<128x128xf32, #tpu.memory_space<vmem>>, %arg13: memref<8x128xf32, #tpu.memory_space<vmem>>) attributes {dimension_semantics = [#tpu.dimension_semantics<arbitrary>, #tpu.dimension_semantics<arbitrary>, #tpu.dimension_semantics<arbitrary>], iteration_bounds = array<i64: 3, 1, 1>, scalar_prefetch = 0 : i64, scratch_operands = 3 : i64, tpu.core_type = #tpu.core_type<tc>, window_params = [{transform_indices = @transform_0, window_bounds = array<i64: 128, 128>}, {pipeline_mode = #tpu.pipeline_mode<synchronous>, transform_indices = @transform_1, window_bounds = array<i64: 128, 128>}, {transform_indices = @transform_2, window_bounds = array<i64: 1, 128, 128>}, {transform_indices = @transform_3, window_bounds = array<i64: 1, 1, 128>}, {transform_indices = @transform_4, window_bounds = array<i64: 8, 128>}, {pipeline_mode = #tpu.pipeline_mode<synchronous>, transform_indices = @transform_5, window_bounds = array<i64: 128, 128>}, {pipeline_mode = #tpu.pipeline_mode<synchronous>, transform_indices = @transform_6, window_bounds = array<i64: 1, 128>}, {pipeline_mode = #tpu.pipeline_mode<synchronous>, transform_indices = @transform_7, window_bounds = array<i64: 8, 128>}]} {
    %c0_i32 = arith.constant 0 : i32
    %0 = arith.cmpi eq, %arg0, %c0_i32 : i32
    %c0_i32_0 = arith.constant 0 : i32
    %1 = arith.cmpi eq, %arg1, %c0_i32_0 : i32
    %2 = arith.andi %0, %1 : i1
    %c0_i32_1 = arith.constant 0 : i32
    %3 = arith.cmpi eq, %arg2, %c0_i32_1 : i32
    %4 = arith.andi %2, %3 : i1
    %5 = arith.extui %4 : i1 to i32
    %c0_i32_2 = arith.constant 0 : i32
    %6 = arith.cmpi ne, %5, %c0_i32_2 : i32
    scf.if %6 {
      %c0_17 = arith.constant 0 : index
      %c0_18 = arith.constant 0 : index
      %34 = vector.load %arg4[%c0_17, %c0_18] : memref<128x128xbf16, #tpu.memory_space<vmem>>, vector<128x128xbf16>
      %c0_19 = arith.constant 0 : index
      %c0_20 = arith.constant 0 : index
      %c0_21 = arith.constant 0 : index
      %35 = vector.load %arg11[%c0_19, %c0_20, %c0_21] : memref<2x128x128xbf16, #tpu.memory_space<vmem>>, vector<1x128x128xbf16>
      %36 = vector.shape_cast %35 : vector<1x128x128xbf16> to vector<128x128xbf16>
      %37 = vector.shape_cast %34 : vector<128x128xbf16> to vector<1x128x128xbf16>
      tpu.vector_store %arg11[%c0_19, %c0_20, %c0_21], %37 {strides = array<i32>} : memref<2x128x128xbf16, #tpu.memory_space<vmem>>, vector<1x128x128xbf16>,
      %cst_22 = arith.constant 0.000000e+00 : f32
      %38 = vector.broadcast %cst_22 : f32 to vector<8x128xf32>
      %c0_23 = arith.constant 0 : index
      %c0_24 = arith.constant 0 : index
      %39 = vector.load %arg13[%c0_23, %c0_24] : memref<8x128xf32, #tpu.memory_space<vmem>>, vector<8x128xf32>
      tpu.vector_store %arg13[%c0_23, %c0_24], %38 {strides = array<i32>} : memref<8x128xf32, #tpu.memory_space<vmem>>, vector<8x128xf32>,
      %cst_25 = arith.constant 0.000000e+00 : f32
      %40 = vector.broadcast %cst_25 : f32 to vector<8x128xf32>
      %c0_26 = arith.constant 0 : index
      %c0_27 = arith.constant 0 : index
      %41 = vector.load %arg10[%c0_26, %c0_27] : memref<8x128xf32, #tpu.memory_space<vmem>>, vector<8x128xf32>
      tpu.vector_store %arg10[%c0_26, %c0_27], %40 {strides = array<i32>} : memref<8x128xf32, #tpu.memory_space<vmem>>, vector<8x128xf32>,
    } else {
    }
    %c0_i32_3 = arith.constant 0 : i32
    %7 = arith.cmpi eq, %arg2, %c0_i32_3 : i32
    %8 = arith.extui %7 : i1 to i32
    %c0_i32_4 = arith.constant 0 : i32
    %9 = arith.cmpi ne, %8, %c0_i32_4 : i32
    scf.if %9 {
      %cst_17 = arith.constant 0.000000e+00 : f32
      %34 = vector.broadcast %cst_17 : f32 to vector<128x128xf32>
      %c0_18 = arith.constant 0 : index
      %c0_19 = arith.constant 0 : index
      %35 = vector.load %arg12[%c0_18, %c0_19] : memref<128x128xf32, #tpu.memory_space<vmem>>, vector<128x128xf32>
      tpu.vector_store %arg12[%c0_18, %c0_19], %34 {strides = array<i32>} : memref<128x128xf32, #tpu.memory_space<vmem>>, vector<128x128xf32>,
    } else {
    }
    %c2_i32 = arith.constant 2 : i32
    %c0_i32_5 = arith.constant 0 : i32
    %10 = arith.cmpi eq, %c2_i32, %c0_i32_5 : i32
    %c1_i32 = arith.constant 1 : i32
    %11 = arith.select %10, %c1_i32, %c2_i32 : i32
    %12 = arith.remsi %arg0, %11 : i32
    %c0_i32_6 = arith.constant 0 : i32
    %13 = arith.cmpi ne, %12, %c0_i32_6 : i32
    %c0_i32_7 = arith.constant 0 : i32
    %14 = arith.cmpi slt, %12, %c0_i32_7 : i32
    %c0_i32_8 = arith.constant 0 : i32
    %15 = arith.cmpi slt, %11, %c0_i32_8 : i32
    %16 = arith.xori %14, %15 : i1
    %17 = arith.andi %16, %13 : i1
    %18 = arith.addi %12, %11 : i32
    %19 = arith.select %17, %18, %12 : i32
    %c128_i32 = arith.constant 128 : i32
    %20 = arith.muli %arg2, %c128_i32 : i32
    %21 = tpu.assume_multiple %20, 128 : i32
    %22 = arith.index_cast %19 : i32 to index
    %23 = arith.index_cast %21 : i32 to index
    %c0 = arith.constant 0 : index
    %24 = vector.load %arg11[%22, %23, %c0] : memref<2x128x128xbf16, #tpu.memory_space<vmem>>, vector<1x128x128xbf16>
    %25 = vector.shape_cast %24 : vector<1x128x128xbf16> to vector<128x128xbf16>
    %c0_9 = arith.constant 0 : index
    %c0_10 = arith.constant 0 : index
    %26 = vector.load %arg12[%c0_9, %c0_10] : memref<128x128xf32, #tpu.memory_space<vmem>>, vector<128x128xf32>
    %c0_11 = arith.constant 0 : index
    %c0_12 = arith.constant 0 : index
    %27 = vector.load %arg3[%c0_11, %c0_12] : memref<128x128xbf16, #tpu.memory_space<vmem>>, vector<128x128xbf16>
    %cst = arith.constant dense<0.000000e+00> : vector<128x128xf32>
    %28 = tpu.matmul %27, %25, %cst {dimension_numbers = #tpu.dot_dimension_numbers<[1], [0], [0], [1], [0, 0, 1, 1], [], []>} : vector<128x128xbf16>, vector<128x128xbf16>, vector<128x128xf32> -> vector<128x128xf32>
    %29 = arith.addf %26, %28 : vector<128x128xf32>
    %c0_13 = arith.constant 0 : index
    %c0_14 = arith.constant 0 : index
    %30 = vector.load %arg12[%c0_13, %c0_14] : memref<128x128xf32, #tpu.memory_space<vmem>>, vector<128x128xf32>
    tpu.vector_store %arg12[%c0_13, %c0_14], %29 {strides = array<i32>} : memref<128x128xf32, #tpu.memory_space<vmem>>, vector<128x128xf32>,
    %c0_i32_15 = arith.constant 0 : i32
    %31 = arith.cmpi eq, %arg2, %c0_i32_15 : i32
    %32 = arith.extui %31 : i1 to i32
    %c0_i32_16 = arith.constant 0 : i32
    %33 = arith.cmpi ne, %32, %c0_i32_16 : i32
    scf.if %33 {
      %c0_17 = arith.constant 0 : index
      %c0_18 = arith.constant 0 : index
      %34 = vector.load %arg12[%c0_17, %c0_18] : memref<128x128xf32, #tpu.memory_space<vmem>>, vector<128x128xf32>
      %c0_19 = arith.constant 0 : index
      %c0_20 = arith.constant 0 : index
      %c0_21 = arith.constant 0 : index
      %35 = vector.load %arg5[%c0_19, %c0_20, %c0_21] : memref<1x128x128xf32, #tpu.memory_space<vmem>>, vector<1x128x128xf32>
      %36 = vector.shape_cast %35 : vector<1x128x128xf32> to vector<128x128xf32>
      %cst_22 = arith.constant dense<0.000000e+00> : vector<128x128xf32>
      %37 = tpu.matmul %34, %36, %cst_22 {dimension_numbers = #tpu.dot_dimension_numbers<[1], [0], [0], [1], [0, 0, 1, 1], [], []>} : vector<128x128xf32>, vector<128x128xf32>, vector<128x128xf32> -> vector<128x128xf32>
      %c0_23 = arith.constant 0 : index
      %c0_24 = arith.constant 0 : index
      %c0_25 = arith.constant 0 : index
      %38 = vector.load %arg6[%c0_23, %c0_24, %c0_25] : memref<1x1x128xf32, #tpu.memory_space<vmem>>, vector<1x1x128xf32>
      %39 = vector.shape_cast %38 : vector<1x1x128xf32> to vector<1x128xf32>
      %40 = vector.broadcast %39 : vector<1x128xf32> to vector<128x128xf32>
      %41 = arith.addf %37, %40 : vector<128x128xf32>
      %cst_26 = arith.constant 0.000000e+00 : f32
      %42 = vector.broadcast %cst_26 : f32 to vector<128x128xf32>
      %43 = arith.maximumf %41, %42 : vector<128x128xf32>
      %c128_i32_27 = arith.constant 128 : i32
      %44 = arith.muli %arg1, %c128_i32_27 : i32
      %45 = tpu.assume_multiple %44, 128 : i32
      %46 = arith.truncf %43 : vector<128x128xf32> to vector<128x128xbf16>
      %c1_i32_28 = arith.constant 1 : i32
      %47 = arith.addi %arg0, %c1_i32_28 : i32
      %c2_i32_29 = arith.constant 2 : i32
      %c0_i32_30 = arith.constant 0 : i32
      %48 = arith.cmpi eq, %c2_i32_29, %c0_i32_30 : i32
      %c1_i32_31 = arith.constant 1 : i32
      %49 = arith.select %48, %c1_i32_31, %c2_i32_29 : i32
      %50 = arith.remsi %47, %49 : i32
      %c0_i32_32 = arith.constant 0 : i32
      %51 = arith.cmpi ne, %50, %c0_i32_32 : i32
      %c0_i32_33 = arith.constant 0 : i32
      %52 = arith.cmpi slt, %50, %c0_i32_33 : i32
      %c0_i32_34 = arith.constant 0 : i32
      %53 = arith.cmpi slt, %49, %c0_i32_34 : i32
      %54 = arith.xori %52, %53 : i1
      %55 = arith.andi %54, %51 : i1
      %56 = arith.addi %50, %49 : i32
      %57 = arith.select %55, %56, %50 : i32
      %58 = arith.index_cast %57 : i32 to index
      %59 = arith.index_cast %45 : i32 to index
      %c0_35 = arith.constant 0 : index
      %60 = vector.load %arg11[%58, %59, %c0_35] : memref<2x128x128xbf16, #tpu.memory_space<vmem>>, vector<1x128x128xbf16>
      %61 = vector.shape_cast %60 : vector<1x128x128xbf16> to vector<128x128xbf16>
      %62 = vector.shape_cast %46 : vector<128x128xbf16> to vector<1x128x128xbf16>
      tpu.vector_store %arg11[%58, %59, %c0_35], %62 {strides = array<i32>} : memref<2x128x128xbf16, #tpu.memory_space<vmem>>, vector<1x128x128xbf16>,
      %c2_i32_36 = arith.constant 2 : i32
      %63 = arith.cmpi eq, %arg0, %c2_i32_36 : i32
      %64 = arith.extui %63 : i1 to i32
      %c0_i32_37 = arith.constant 0 : i32
      %65 = arith.cmpi ne, %64, %c0_i32_37 : i32
      scf.if %65 {
        %c0_41 = arith.constant 0 : index
        %c0_42 = arith.constant 0 : index
        %71 = vector.load %arg13[%c0_41, %c0_42] : memref<8x128xf32, #tpu.memory_space<vmem>>, vector<8x128xf32>
        %c0_43 = arith.constant 0 : index
        %c0_44 = arith.constant 0 : index
        %72 = vector.load %arg7[%c0_43, %c0_44] : memref<8x128xf32, #tpu.memory_space<vmem>>, vector<8x128xf32>
        %cst_45 = arith.constant dense<0.000000e+00> : vector<8x128xf32>
        %73 = tpu.matmul %72, %43, %cst_45 {dimension_numbers = #tpu.dot_dimension_numbers<[1], [0], [0], [1], [0, 0, 1, 1], [], []>} : vector<8x128xf32>, vector<128x128xf32>, vector<8x128xf32> -> vector<8x128xf32>
        %74 = arith.addf %71, %73 : vector<8x128xf32>
        %c0_46 = arith.constant 0 : index
        %c0_47 = arith.constant 0 : index
        %75 = vector.load %arg13[%c0_46, %c0_47] : memref<8x128xf32, #tpu.memory_space<vmem>>, vector<8x128xf32>
        tpu.vector_store %arg13[%c0_46, %c0_47], %74 {strides = array<i32>} : memref<8x128xf32, #tpu.memory_space<vmem>>, vector<8x128xf32>,
      } else {
      }
      %c2_i32_38 = arith.constant 2 : i32
      %66 = arith.cmpi eq, %arg0, %c2_i32_38 : i32
      %c0_i32_39 = arith.constant 0 : i32
      %67 = arith.cmpi eq, %arg1, %c0_i32_39 : i32
      %68 = arith.andi %66, %67 : i1
      %69 = arith.extui %68 : i1 to i32
      %c0_i32_40 = arith.constant 0 : i32
      %70 = arith.cmpi ne, %69, %c0_i32_40 : i32
      scf.if %70 {
        %c0_41 = arith.constant 0 : index
        %c0_42 = arith.constant 0 : index
        %71 = vector.load %arg13[%c0_41, %c0_42] : memref<8x128xf32, #tpu.memory_space<vmem>>, vector<8x128xf32>
        %c0_43 = arith.constant 0 : index
        %c0_44 = arith.constant 0 : index
        %72 = vector.load %arg8[%c0_43, %c0_44] : memref<128x128xf32, #tpu.memory_space<vmem>>, vector<128x128xf32>
        %cst_45 = arith.constant dense<0.000000e+00> : vector<8x128xf32>
        %73 = tpu.matmul %71, %72, %cst_45 {dimension_numbers = #tpu.dot_dimension_numbers<[1], [0], [0], [1], [0, 0, 1, 1], [], []>} : vector<8x128xf32>, vector<128x128xf32>, vector<8x128xf32> -> vector<8x128xf32>
        %c0_46 = arith.constant 0 : index
        %c0_47 = arith.constant 0 : index
        %74 = vector.load %arg9[%c0_46, %c0_47] : memref<1x128xf32, #tpu.memory_space<vmem>>, vector<1x128xf32>
        %75 = vector.broadcast %74 : vector<1x128xf32> to vector<8x128xf32>
        %76 = arith.addf %73, %75 : vector<8x128xf32>
        %c0_48 = arith.constant 0 : index
        %c0_49 = arith.constant 0 : index
        %77 = vector.load %arg10[%c0_48, %c0_49] : memref<8x128xf32, #tpu.memory_space<vmem>>, vector<8x128xf32>
        tpu.vector_store %arg10[%c0_48, %c0_49], %76 {strides = array<i32>} : memref<8x128xf32, #tpu.memory_space<vmem>>, vector<8x128xf32>,
      } else {
      }
    } else {
    }
    return
  }
  func.func @transform_0(%arg0: i32, %arg1: i32, %arg2: i32) -> (i32, i32) {
    %c0_i32 = arith.constant 0 : i32
    return %arg1, %arg2 : i32, i32
  }
  func.func @transform_1(%arg0: i32, %arg1: i32, %arg2: i32) -> (i32, i32) {
    %c0_i32 = arith.constant 0 : i32
    %c0_i32_0 = arith.constant 0 : i32
    %c0_i32_1 = arith.constant 0 : i32
    return %c0_i32, %c0_i32_0 : i32, i32
  }
  func.func @transform_2(%arg0: i32, %arg1: i32, %arg2: i32) -> (i32, i32, i32) {
    %c0_i32 = arith.constant 0 : i32
    %c0_i32_0 = arith.constant 0 : i32
    %c0_i32_1 = arith.constant 0 : i32
    return %arg0, %c0_i32, %c0_i32_0 : i32, i32, i32
  }
  func.func @transform_3(%arg0: i32, %arg1: i32, %arg2: i32) -> (i32, i32, i32) {
    %c0_i32 = arith.constant 0 : i32
    %c0_i32_0 = arith.constant 0 : i32
    %c0_i32_1 = arith.constant 0 : i32
    return %arg0, %c0_i32, %c0_i32_0 : i32, i32, i32
  }
  func.func @transform_4(%arg0: i32, %arg1: i32, %arg2: i32) -> (i32, i32) {
    %c0_i32 = arith.constant 0 : i32
    %c0_i32_0 = arith.constant 0 : i32
    return %c0_i32, %arg1 : i32, i32
  }
  func.func @transform_5(%arg0: i32, %arg1: i32, %arg2: i32) -> (i32, i32) {
    %c0_i32 = arith.constant 0 : i32
    %c0_i32_0 = arith.constant 0 : i32
    %c0_i32_1 = arith.constant 0 : i32
    return %c0_i32, %c0_i32_0 : i32, i32
  }
  func.func @transform_6(%arg0: i32, %arg1: i32, %arg2: i32) -> (i32, i32) {
    %c0_i32 = arith.constant 0 : i32
    %c0_i32_0 = arith.constant 0 : i32
    %c0_i32_1 = arith.constant 0 : i32
    return %c0_i32, %c0_i32_0 : i32, i32
  }
  func.func @transform_7(%arg0: i32, %arg1: i32, %arg2: i32) -> (i32, i32) {
    %c0_i32 = arith.constant 0 : i32
    %c0_i32_0 = arith.constant 0 : i32
    %c0_i32_1 = arith.constant 0 : i32
    return %c0_i32, %c0_i32_0 : i32, i32
  }
}

</mosaic_0001>

<bundles_post_ra>
// kernel: tpu_custom_call.1
= control target key start
LH: loop header
LB: loop body
LE: loop exit
PB: predicated region body
PF: predicated region fallthrough
CT: control target
= control target key end

     0   :  { %s2342_s0 = inlined_call_operand.hbm [shape: bf16[128,128], index: 0, kind: input, shape index: {}]   ;;  %s2343_s1 = inlined_call_operand.hbm [shape: bf16[128,128], index: 1, kind: input, shape index: {}]   ;;  %s2344_s2 = inlined_call_operand.hbm [shape: f32[3,128,128], index: 2, kind: input, shape index: {}]   ;;  %s2345_s3 = inlined_call_operand.vmem [shape: f32[3,1,128], index: 3, kind: input, shape index: {}]   ;;  %s2346_s4 = inlined_call_operand.vmem [shape: f32[8,128], index: 4, kind: input, shape index: {}]   ;;  %s2347_s5 = inlined_call_operand.hbm [shape: f32[128,128], index: 5, kind: input, shape index: {}]   ;;  %s2348_s6 = inlined_call_operand.vmem [shape: f32[1,128], index: 6, kind: input, shape index: {}]   ;;  %s2349_s7 = inlined_call_operand.hbm [shape: f32[8,128], index: 7, kind: output, shape index: {}]  }
   0x1   :  { %2355 = sst [smem:[#allocation18_spill]] %s2345_s3 }
   0x2   :  { %2356 = sst [smem:[#allocation19_spill]] %s2346_s4 }
   0x3   :  { %2357 = sst [smem:[#allocation20_spill]] %s2348_s6 }
   0x4   :  { %2358 = sst [smem:[#allocation21_spill]] %s2349_s7 }
   0x5   :  { %12 = vsyncpa [#allocation6], 0 }
   0x6   :  { %13 = vsyncpa [#allocation9], 0 }
   0x7   :  { %14 = vsyncpa [#allocation7], 0  ;;  %s2037_s24 = smov 0   ;;  %s2039_s25 = smov 0  }
   0x8   :  { %s2041_s26 = smov 0   ;;  %s2043_s27 = smov 0  }
   0x9   :  { %s2045_s28 = smov 0   ;;  %s2047_s29 = smov 0  }
   0xa LB: > { %s2066_s30 = sadd.s32 4294967295, %s1979_s29   ;;  %p102_p0 = scmp.ne.s32.totalorder %s1967_s26, %s1963_s25  ;;  %s1979_s29 = sphi %s2047_s29, %s20_s29   ;;  %s1975_s28 = sphi %s2045_s28, %s2382_s28   ;;  %s1971_s27 = sphi %s2043_s27, %s2381_s27   ;;  %s1967_s26 = sphi %s2041_s26, %s2380_s26   ;;  %s1963_s25 = sphi %s2039_s25, %s2379_s25   ;;  %s1959_s24 = sphi %s2037_s24, %s2378_s24  }
   0xb   : > { %p103_p1 = scmp.eq.s32.totalorder %s1979_s29, 0  ;;  %p108_p2 = scmp.ne.s32.totalorder %s1963_s25, %s1959_s24 }
   0xc   : > { %p2350_p3 = scmp.eq.s32.totalorder %s2066_s30, 0  ;;  %p1277_p4 = scmp.ge.s32.totalorder %s1979_s29, 1 }
   0xd   : > { %p104_p5 = por %p103_p1, %p102_p0  ;;  %p234_p6 = scmp.lt.s32.totalorder %s1979_s29, 4 }
   0xe   : > { %p2077_p7 = por %p2350_p3, %p108_p2  ;;  %s1981_s10 = smov [#allocation5]  }
   0xf   : > { %p2081_p8 = pnand %p1277_p4, %p234_p6  ;;  %s250_s11 = sshll.u32 %s1981_s10, 4  ;;  %s251_s11 = int_to_ptr.vmem [resolvable:$true] %s250_s11 }
  0x10   : > { %s2359_s8 = scalar_select %p2077_p7, 1, 0 }
  0x11   : > { %s2360_s9 = scalar_select %p2081_p8, 1, 0 }
  0x12   : > { %p1671_p9 = pneg %p2081_p8  ;;  %p1688_p11 = scmp.lt.s32.totalorder %s1979_s29, 3 }
  0x13   : > { %s1773_s16 = scalar_lea.hbm %s2342_s0, 1024 }
  0x14   : > { %p2089_p10 = pnand %p1671_p9, %p2350_p3  ;;  %p2094_p12 = pnand %p1688_p11, %p104_p5 }
  0x15   : > { %p1774_p13 = scmp.ne.s32.totalorder %s2342_s0, %s1773_s16  ;;  %p1780_p4 = scmp.lt.u32.totalorder %s1773_s16, %s2342_s0 }
  0x16   : > { %s2362_s13 = scalar_select %p2094_p12, 1, 0 }
  0x17   : > { %p2106_p0 = pneg %p2089_p10 }
  0x19   : > { %p1776_p1 = pnand %p2106_p0, %p1774_p13 }
  0x1b   : > { %p1777_p2 = pneg %p1776_p1 }
  0x1d   : > { %p1782_p5 = pnand %p1780_p4, %p1777_p2 }
  0x1f   : > { %1785 = shalt.err (!%p1782_p5)
}
  0x20   : > { %s1786_s22 = scalar_lea.vmem %s251_s11, 1024  ;;  %p1794_p3 = scmp.lt.s32.totalorder %s251_s11, %s251_s11 }
  0x21   : > { %p1787_p6 = scmp.ne.s32.totalorder %s251_s11, %s1786_s22  ;;  %p1795_p7 = scmp.lt.s32.totalorder %s1786_s22, %s1786_s22 }
  0x23   : > { %p1789_p9 = pnand %p1787_p6, %p2106_p0  ;;  %p1796_p8 = por %p1795_p7, %p1794_p3 }
  0x25   : > { %p1790_p11 = pneg %p1789_p9 }
  0x27   : > { %p1797_p12 = pnand %p1796_p8, %p1790_p11 }
  0x29   : > { %1800 = shalt.err (!%p1797_p12)
}
  0x2a   : > { %s1982_s23 = smov 64   ;;  %s1983_s24 = smov 4  }
  0x2b   : > { %1674 = dma.hbm_to_vmem [thread:$0]  (!%p2089_p10), %s2342_s0, 1024, %s251_s11, [#allocation6], %s1982_s23, %s1982_s23, %s1983_s24  }
  0x2c   : > { %s1984_s15 = smov [#allocation8]   ;;  %s1985_s17 = smov [#allocation11]  }
  0x2d   : > { %s263_s16 = sshll.u32 %s1984_s15, 4  ;;  %s283_s18 = sshll.u32 %s1985_s17, 4  ;;  %s264_s16 = int_to_ptr.vmem [resolvable:$true] %s263_s16  ;;  %s284_s18 = int_to_ptr.vmem [resolvable:$true] %s283_s18 }
  0x2e   : > { %s1801_s22 = scalar_lea.hbm %s2343_s1, 1024 }
  0x2f   : > { %p1802_p3 = scmp.ne.s32.totalorder %s2343_s1, %s1801_s22  ;;  %p1808_p12 = scmp.lt.u32.totalorder %s1801_s22, %s2343_s1 }
  0x31   : > { %p1804_p7 = pnand %p1802_p3, %p2106_p0 }
  0x33   : > { %p1805_p8 = pneg %p1804_p7 }
  0x35   : > { %p1810_p13 = pnand %p1808_p12, %p1805_p8 }
  0x37   : > { %1813 = shalt.err (!%p1810_p13)
}
  0x38   : > { %s1814_s11 = scalar_lea.vmem %s264_s16, 1024  ;;  %p1822_p5 = scmp.lt.s32.totalorder %s264_s16, %s264_s16 }
  0x39   : > { %p1815_p1 = scmp.ne.s32.totalorder %s264_s16, %s1814_s11  ;;  %p1823_p6 = scmp.lt.s32.totalorder %s1814_s11, %s1814_s11 }
  0x3b   : > { %p1817_p2 = pnand %p1815_p1, %p2106_p0  ;;  %p1824_p9 = por %p1823_p6, %p1822_p5 }
  0x3d   : > { %p1818_p4 = pneg %p1817_p2 }
  0x3f   : > { %p1825_p11 = pnand %p1824_p9, %p1818_p4 }
  0x41   : > { %1828 = shalt.err (!%p1825_p11)
}
  0x42   : > { %1677 = dma.hbm_to_vmem [thread:$0]  (!%p2089_p10), %s2343_s1, 1024, %s264_s16, [#allocation9], %s1982_s23, %s1982_s23, %s1983_s24  }
  0x43   : > { %s1829_s10 = scalar_lea.hbm %s2347_s5, 2048 }
  0x44   : > { %p1830_p3 = scmp.ne.s32.totalorder %s2347_s5, %s1829_s10  ;;  %p1836_p12 = scmp.lt.u32.totalorder %s1829_s10, %s2347_s5 }
  0x46   : > { %p1832_p7 = pnand %p1830_p3, %p2106_p0 }
  0x48   : > { %p1833_p8 = pneg %p1832_p7 }
  0x4a   : > { %p1838_p13 = pnand %p1836_p12, %p1833_p8 }
  0x4c   : > { %1841 = shalt.err (!%p1838_p13)
}
  0x4d   : > { %s1842_s21 = scalar_lea.vmem %s284_s18, 2048  ;;  %p1850_p5 = scmp.lt.s32.totalorder %s284_s18, %s284_s18 }
  0x4e   : > { %p1843_p1 = scmp.ne.s32.totalorder %s284_s18, %s1842_s21  ;;  %p1851_p6 = scmp.lt.s32.totalorder %s1842_s21, %s1842_s21 }
  0x50   : > { %p1845_p2 = pnand %p1843_p1, %p2106_p0  ;;  %p1852_p9 = por %p1851_p6, %p1850_p5 }
  0x52   : > { %p1846_p4 = pneg %p1845_p2 }
  0x54   : > { %p1853_p11 = pnand %p1852_p9, %p1846_p4 }
  0x56   : > { %1856 = shalt.err (!%p1853_p11)
}
  0x57   : > { %s1986_s23 = smov 128   ;;  %s1987_s24 = smov 8  }
  0x58   : > { %1680 = dma.hbm_to_vmem [thread:$0]  (!%p2089_p10), %s2347_s5, 2048, %s284_s18, [#allocation9], %s1986_s23, %s1986_s23, %s1987_s24  }
  0x59   : > { %s95_s22 = sadd.s32 1, %s1967_s26  ;;  %s39_s11 = sadd.s32 1, %s1975_s28 }
  0x5a   : > { %s300_s6 = sand.u32 1, %s1979_s29   ;;  %p41_p0 = scmp.ge.s32.totalorder %s39_s11, 3 }
  0x5b   : > { %s302_s7 = sand.u32 1, %s1967_s26   ;;  %s1327_s3 = sshll.u32 %s1975_s28, 11 }
  0x5c   : > { %s2384_s11 = smov (%p41_p0, %s39_s11), 0  ;;  %s1283_s12 = sshll.u32 %s302_s7, 7 }
  0x5d   : > { %s2171_s14 = scalar_lea.hbm %s2344_s2, %s1327_s3  ;;  %s92_s18 = ssub.s32 %s1975_s28, %s2384_s11 }
  0x5e   : > { %p93_p10 = scmp.eq.s32.totalorder %s92_s18, 0  ;;  %s304_s15 = scalar_lea.vmem [#allocation10], %s1283_s12 }
  0x5f   : > { %s311_s17 = sshll.u32 %s304_s15, 4  ;;  %s2180_s21 = scalar_lea.sflag [#allocation6], %s300_s6  ;;  %s2175_s17 = int_to_ptr.vmem [resolvable:$true] %s311_s17 }
  0x60   : > { %s2178_s20 = scalar_select %p93_p10, %s1967_s26, %s95_s22  }
  0x61   : > { %s1857_s19 = scalar_lea.hbm %s2171_s14, 2048  ;;  %p2364_p7 = scmp.ne.s32.totalorder %s2362_s13, 0 }
  0x62   : > { %p1858_p3 = scmp.ne.s32.totalorder %s2171_s14, %s1857_s19  ;;  %s1862_s3 = scalar_lea.hbm %s2344_s2, 6144 }
  0x63   : > { %p1859_p8 = pneg %p2364_p7  ;;  %p1863_p1 = scmp.lt.u32.totalorder %s2171_s14, %s2344_s2 }
  0x64   : > { %p1864_p2 = scmp.lt.u32.totalorder %s1862_s3, %s1857_s19  ;;  %p1866_p5 = scmp.lt.u32.totalorder %s1857_s19, %s2171_s14 }
  0x65   : > { %p1860_p12 = pnand %p1859_p8, %p1858_p3 }
  0x66   : > { %p1865_p4 = por %p1864_p2, %p1863_p1 }
  0x67   : > { %p1861_p13 = pneg %p1860_p12 }
  0x68   : > { %p1867_p6 = por %p1866_p5, %p1865_p4 }
  0x6a   : > { %p1868_p9 = pnand %p1867_p6, %p1861_p13 }
  0x6c   : > { %1871 = shalt.err (!%p1868_p9)
}
  0x6d   : > { %s1872_s22 = scalar_lea.vmem %s2175_s17, 2048  ;;  %s1988_s6 = smov [#allocation10]  }
  0x6e   : > { %p1873_p11 = scmp.ne.s32.totalorder %s2175_s17, %s1872_s22  ;;  %s1877_s10 = sshll.u32 %s1988_s6, 4  ;;  %s1878_s10 = int_to_ptr.vmem [resolvable:$false] %s1877_s10 }
  0x6f   : > { %s1879_s18 = scalar_lea.vmem %s1878_s10, 4096  ;;  %p1880_p3 = scmp.lt.s32.totalorder %s2175_s17, %s1878_s10 }
  0x70   : > { %p1875_p0 = pnand %p1873_p11, %p1859_p8  ;;  %p1881_p12 = scmp.lt.s32.totalorder %s1879_s18, %s1872_s22 }
  0x72   : > { %p1876_p10 = pneg %p1875_p0  ;;  %p1882_p1 = por %p1881_p12, %p1880_p3 }
  0x74   : > { %p1883_p2 = pnand %p1882_p1, %p1876_p10 }
  0x76   : > { %1886 = shalt.err (!%p1883_p2)
}
  0x77   : > { %1684 = dma.hbm_to_vmem [thread:$0]  (!%p2364_p7), %s2171_s14, 2048, %s2175_s17, %s2180_s21, %s1986_s23, %s1986_s23, %s1987_s24  }
  0x78   : > { %p2365_p8 = scmp.ne.s32.totalorder %s2360_s9, 0 }
  0x79   : > { %p2366_p13 = scmp.eq.s32.totalorder (!%p2365_p8), %s2066_s30, 0 }
  0x7a   : > { %329 = sbr.rel (%p2365_p8) target bundleno = 1155 (0x483), region = 48 }
  0x81   : > { %1938 = dma.done.wait (%p2366_p13), [#allocation6], 1024   ;;  %p2367_p4 = pmov %p2366_p13 }
  0x83   : > { %1940 = vsyncadd (%p2367_p4), [#allocation6], 4294966272  ;;  %p2368_p5 = pmov %p2367_p4 }
  0x84   : > { %p2369_p6 = pmov %p2367_p4 }
  0x85   : > { %1942 = dma.done.wait (%p2368_p5), [#allocation9], 1024  }
  0x86   : > { %1944 = vsyncadd (%p2369_p6), [#allocation9], 4294966272  ;;  %s339_s13 = sand.u32 1, %s2066_s30   ;;  %s341_s23 = sand.u32 1, %s1963_s25  }
  0x87   : > { %s1289_s24 = sshll.u32 %s341_s23, 7  ;;  %s340_s9 = scalar_lea.sflag [#allocation6], %s339_s13 }
  0x88   : > { %s2223_s14 = scalar_lea.vmem [#allocation10], %s1289_s24  ;;  %p2370_p7 = scmp.ne.s32.totalorder %s2359_s8, 0 }
  0x8a   : > { %1946 = dma.done.wait (%p2370_p7), %s340_s9, 2048  }
  0x8b   : > { %1948 = vsyncadd (%p2370_p7), %s340_s9, 4294965248  ;;  %p2371_p9 = pmov %p2367_p4 }
  0x8c   : > { %p2372_p11 = pmov %p2367_p4 }
  0x8d   : > { %1950 = dma.done.wait (%p2371_p9), [#allocation9], 2048  }
  0x8e   : > { %1952 = vsyncadd (%p2372_p11), [#allocation9], 4294965248  ;;  %p381_p0 = scmp.lt.s32.totalorder %s1971_s27, 2  ;;  %p389_p10 = scmp.eq.s32.totalorder %s1971_s27, 0 }
  0x8f   : > { %s2373_s19 = sld [smem:[#allocation18_spill]]  ;;  %v1757_v0 = vld [vmem:[#allocation8] sm:$0xff] (%p389_p10)   ;;  %v1758_v1 = vld [vmem:[#allocation8 + $0x8] sm:$0xff] (%p389_p10)   ;;  %v1989_v2 = vmov (%p389_p10), 0.0   ;;  %v1759_v3 = vld [vmem:[#allocation8 + $0x10] sm:$0xff] (%p389_p10)  }
  0x90   : > { %s2236_s15 = scalar_select %p381_p0, %s1971_s27, 2 }
  0x91   : > { %397 = sbr.rel (!%p389_p10) target bundleno = 152 (0x98), region = 68  ;;  %470 = vst [vmem:[#allocation4] sm:$0xff] (%p389_p10), %v1989_v2  ;;  %471 = vst [vmem:[#allocation12] sm:$0xff] (%p389_p10), %v1989_v2  ;;  %v1760_v4 = vld [vmem:[#allocation8 + $0x18] sm:$0xff] (%p389_p10)   ;;  %v1761_v5 = vld [vmem:[#allocation8 + $0x20] sm:$0xff] (%p389_p10)  }
  0x92   : > { %462 = vst [vmem:[#allocation2] sm:$0xff] (%p389_p10), %v1757_v0  ;;  %463 = vst [vmem:[#allocation2 + $0x8] sm:$0xff] (%p389_p10), %v1758_v1  ;;  %v1762_v6 = vld [vmem:[#allocation8 + $0x28] sm:$0xff] (%p389_p10)   ;;  %v1763_v7 = vld [vmem:[#allocation8 + $0x30] sm:$0xff] (%p389_p10)  }
  0x93   : > { %464 = vst [vmem:[#allocation2 + $0x10] sm:$0xff] (%p389_p10), %v1759_v3  ;;  %465 = vst [vmem:[#allocation2 + $0x18] sm:$0xff] (%p389_p10), %v1760_v4  ;;  %v1764_v8 = vld [vmem:[#allocation8 + $0x38] sm:$0xff] (%p389_p10)  }
  0x94   : > { %466 = vst [vmem:[#allocation2 + $0x20] sm:$0xff] (%p389_p10), %v1761_v5  ;;  %467 = vst [vmem:[#allocation2 + $0x28] sm:$0xff] (%p389_p10), %v1762_v6 }
  0x95   : > { %s383_s16 = scalar_lea.vmem %s2373_s19, %s2236_s15  ;;  %468 = vst [vmem:[#allocation2 + $0x30] sm:$0xff] (%p389_p10), %v1763_v7  ;;  %469 = vst [vmem:[#allocation2 + $0x38] sm:$0xff] (%p389_p10), %v1764_v8 }
  0x98 PF: > { %p491_p3 = scmp.lt.s32.totalorder %s1971_s27, 0  ;;  %s492_s8 = ssub.s32 0, %s1971_s27  ;;  %v1765_v9 = vld [vmem:[#allocation5] sm:$0xff]   ;;  %v747_v11 = vld [vmem:[%s2223_s14 + $0x8] sm:$0xff]  ;;  %v748_v13 = vld [vmem:[%s2223_s14 + $0x10] sm:$0xff] }
  0x99   : > { %s1301_s7 = smin.u32 %s1971_s27, %s492_s8  ;;  %1431 = vmatprep.mubr.bf16.mxu0 %v1765_v9  ;;  %v746_v10 = vld [vmem:[%s2223_s14] sm:$0xff]  ;;  %v749_v14 = vld [vmem:[%s2223_s14 + $0x18] sm:$0xff]  ;;  %v751_v17 = vld [vmem:[%s2223_s14 + $0x28] sm:$0xff]  ;;  %p966_p1 = scmp.eq.s32.totalorder %s1971_s27, 2 }
  0x9a   : > { %s494_s3 = sand.u32 1, %s1301_s7   ;;  %v1573_v12 = vpack.c.bf16 %v747_v11, %v746_v10  ;;  %v1577_v15 = vpack.c.bf16 %v749_v14, %v748_v13  ;;  %v750_v16 = vld [vmem:[%s2223_s14 + $0x20] sm:$0xff]  ;;  %v752_v21 = vld [vmem:[%s2223_s14 + $0x30] sm:$0xff]  ;;  %v753_v22 = vld [vmem:[%s2223_s14 + $0x38] sm:$0xff]  ;;  %s939_s10 = sadd.s32 1, %s1971_s27 }
  0x9b   : > { %s495_s12 = ssub.s32 0, %s494_s3  ;;  %v1581_v20 = vpack.c.bf16 %v751_v17, %v750_v16  ;;  %v1585_v24 = vpack.c.bf16 %v753_v22, %v752_v21  ;;  %v754_v25 = vld [vmem:[%s2223_s14 + $0x40] sm:$0xff]  ;;  %v755_v26 = vld [vmem:[%s2223_s14 + $0x48] sm:$0xff]  ;;  %v756_v29 = vld [vmem:[%s2223_s14 + $0x50] sm:$0xff]  ;;  %s941_s18 = ssub.s32 0, %s939_s10 }
  0x9c   : > { %s2386_s12 = smov (!%p491_p3, %s495_s12), %s494_s3  ;;  %1574 = vmatprep.subr.bf16.mxu1 %v1573_v12  ;;  %v1589_v28 = vpack.c.bf16 %v755_v26, %v754_v25  ;;  %v757_v30 = vld [vmem:[%s2223_s14 + $0x58] sm:$0xff]  ;;  %v758_v33 = vld [vmem:[%s2223_s14 + $0x60] sm:$0xff]  ;;  %v759_v34 = vld [vmem:[%s2223_s14 + $0x68] sm:$0xff]  ;;  %s1315_s13 = smin.u32 %s941_s18, %s939_s10 }
  0x9d   : > { %p1303_p12 = scmp.lt.s32.totalorder %s2386_s12, 0  ;;  %s501_s4 = sadd.s32 2, %s2386_s12  ;;  %1576 = vmatpush3.bf16.msra.mxu1 %v1573_v12  ;;  %v1593_v32 = vpack.c.bf16 %v757_v30, %v756_v29  ;;  %v1597_v36 = vpack.c.bf16 %v759_v34, %v758_v33  ;;  %v1766_v39 = vld [vmem:[#allocation5 + $0x8] sm:$0xff]   ;;  %v1767_v40 = vld [vmem:[#allocation5 + $0x10] sm:$0xff]   ;;  %v1768_v41 = vld [vmem:[#allocation5 + $0x18] sm:$0xff]  }
  0x9e   : > { %1578 = vmatprep.subr.bf16.mxu1 %v1577_v15  ;;  %v1769_v42 = vld [vmem:[#allocation5 + $0x20] sm:$0xff]   ;;  %v1770_v43 = vld [vmem:[#allocation5 + $0x28] sm:$0xff]   ;;  %v1771_v44 = vld [vmem:[#allocation5 + $0x30] sm:$0xff]   ;;  %s943_s23 = sand.u32 1, %s1315_s13   ;;  %p940_p2 = scmp.lt.s32.totalorder %s939_s10, 0 }
  0x9f   : > { %s2388_s4 = smov (!%p1303_p12, %s501_s4), %s2386_s12  ;;  %v1772_v45 = vld [vmem:[#allocation5 + $0x38] sm:$0xff]   ;;  %v760_v46 = vld [vmem:[%s2223_s14 + $0x70] sm:$0xff]  ;;  %s944_s24 = ssub.s32 0, %s943_s23 }
  0xa0   : > { %s1330_s22 = sshll.u32 %s2388_s4, 6  ;;  %v761_v47 = vld [vmem:[%s2223_s14 + $0x78] sm:$0xff]  ;;  %s2390_s24 = smov (!%p940_p2, %s944_s24), %s943_s23 }
  0xa1   : > { %s2251_s6 = scalar_lea.vmem [#allocation2], %s1330_s22  ;;  %1580 = vmatpush3.bf16.msra.mxu1 %v1577_v15  ;;  %v1601_v48 = vpack.c.bf16 %v761_v47, %v760_v46  ;;  %p1317_p8 = scmp.lt.s32.totalorder %s2390_s24, 0  ;;  %v1314_v1 = vld [vmem:[%s383_s16] ss:$0 sm:$0xff] }
  0xa2   : > { %v510_v18 = vld [vmem:[%s2251_s6] sm:$0xff]  ;;  %v511_v19 = vld [vmem:[%s2251_s6 + $0x8] sm:$0xff]  ;;  %v512_v23 = vld [vmem:[%s2251_s6 + $0x10] sm:$0xff]  ;;  %1582 = vmatprep.subr.bf16.mxu1 %v1581_v20  ;;  %s950_s9 = sadd.s32 2, %s2390_s24  ;;  %p1320_p13 = scmp.ne.s32.totalorder %s1971_s27, 2 }
  0xa3   : > { %1415 = vmatprep.subr.bf16.mxu0 %v510_v18  ;;  %v513_v27 = vld [vmem:[%s2251_s6 + $0x18] sm:$0xff]  ;;  %v514_v31 = vld [vmem:[%s2251_s6 + $0x20] sm:$0xff]  ;;  %v515_v35 = vld [vmem:[%s2251_s6 + $0x28] sm:$0xff]  ;;  %s2392_s9 = smov (!%p1317_p8, %s950_s9), %s2390_s24  ;;  %vm1991_vm0 = vmmov (!%p1320_p13), 0   ;;  %s2375_s7 = sld [smem:[#allocation19_spill]] (!%p1320_p13) }
  0xa4   : > { %1416 = vmatpush3.bf16.msra.mxu0 %v510_v18  ;;  %v516_v37 = vld [vmem:[%s2251_s6 + $0x30] sm:$0xff]  ;;  %v517_v38 = vld [vmem:[%s2251_s6 + $0x38] sm:$0xff]  ;;  %s1331_s19 = sshll.u32 %s2392_s9, 6 }
  0xa5   : > { %1417 = vmatprep.subr.bf16.mxu0 %v511_v19  ;;  %1584 = vmatpush3.bf16.msra.mxu1 %v1581_v20  ;;  %s2280_s8 = scalar_lea.vmem [#allocation2], %s1331_s19 }
  0xa6   : > { %1586 = vmatprep.subr.bf16.mxu1 %v1585_v24 }
  0xa8   : > { %1418 = vmatpush3.bf16.msra.mxu0 %v511_v19 }
  0xa9   : > { %1419 = vmatprep.subr.bf16.mxu0 %v512_v23  ;;  %1588 = vmatpush3.bf16.msra.mxu1 %v1585_v24 }
  0xaa   : > { %1590 = vmatprep.subr.bf16.mxu1 %v1589_v28 }
  0xac   : > { %1420 = vmatpush3.bf16.msra.mxu0 %v512_v23 }
  0xad   : > { %1421 = vmatprep.subr.bf16.mxu0 %v513_v27  ;;  %1592 = vmatpush3.bf16.msra.mxu1 %v1589_v28 }
  0xae   : > { %1594 = vmatprep.subr.bf16.mxu1 %v1593_v32 }
  0xb0   : > { %1422 = vmatpush3.bf16.msra.mxu0 %v513_v27 }
  0xb1   : > { %1423 = vmatprep.subr.bf16.mxu0 %v514_v31  ;;  %1596 = vmatpush3.bf16.msra.mxu1 %v1593_v32 }
  0xb2   : > { %1598 = vmatprep.subr.bf16.mxu1 %v1597_v36 }
  0xb4   : > { %1424 = vmatpush3.bf16.msra.mxu0 %v514_v31 }
  0xb5   : > { %1425 = vmatprep.subr.bf16.mxu0 %v515_v35  ;;  %1600 = vmatpush3.bf16.msra.mxu1 %v1597_v36 }
  0xb6   : > { %1602 = vmatprep.subr.bf16.mxu1 %v1601_v48 }
  0xb8   : > { %1426 = vmatpush3.bf16.msra.mxu0 %v515_v35 }
  0xb9   : > { %1427 = vmatprep.subr.bf16.mxu0 %v516_v37  ;;  %1604 = vmatpush3.bf16.msra.mxu1 %v1601_v48 }
  0xbc   : > { %1428 = vmatpush3.bf16.msra.mxu0 %v516_v37 }
  0xbd   : > { %1429 = vmatprep.subr.bf16.mxu0 %v517_v38 }
  0xc0   : > { %1430 = vmatpush3.bf16.msra.mxu0 %v517_v38 }
  0xc3   : > { %1432 = vmatmul.mubr.bf16.vlgmr.msra.gmra.mrb[0].mxu0 %v1766_v39 }
  0xc4   : > { %1435 = vmatprep.mubr.bf16.mxu0 %v1767_v40 }
  0xcb   : > { %1436 = vmatmul.mubr.bf16.gmra.mrb[4].mxu0 %v1768_v41 }
  0xcc   : > { %1439 = vmatprep.mubr.bf16.mxu0 %v1769_v42 }
  0xd3   : > { %1440 = vmatmul.mubr.bf16.gmra.mrb[8].mxu0 %v1770_v43 }
  0xd4   : > { %1443 = vmatprep.mubr.bf16.mxu0 %v1771_v44 }
  0xdb   : > { %1444 = vmatmul.mubr.bf16.gmra.mrb[12].mxu0 %v1772_v45 }
 0x196   : > { %v1433_v49 = vpop.f32.mrb[0].mxu0 }
 0x197   : > { %v632_v50 = vpop.f32.mrb[1].mxu0 }
 0x198   : > { %v1434_v51 = vpop.f32.mrb[2].mxu0  ;;  %1479 = vmatprep.mubr.f32.mxu1 %v632_v50 }
 0x199   : > { %v635_v52 = vpop.f32.mrb[3].mxu0 }
 0x19a   : > { %1480 = vmatmul.mubr.f32.vlgmr.msra.gmra.mrb[0].mxu1 %v635_v52 }
 0x19b   : > { %1482 = vmatprep.mubr.f32.mxu1 %v1433_v49 }
 0x19e   : > { %v1437_v53 = vpop.f32.mrb[4].mxu0  ;;  %1483 = vmatmul.mubr.f32.gmra.mrb[2].mxu1 %v1434_v51 }
 0x19f   : > { %v648_v54 = vpop.f32.mrb[5].mxu0 }
 0x1a0   : > { %v1438_v55 = vpop.f32.mrb[6].mxu0  ;;  %1485 = vmatprep.mubr.f32.mxu1 %v648_v54 }
 0x1a1   : > { %v651_v56 = vpop.f32.mrb[7].mxu0 }
 0x1a2   : > { %1486 = vmatmul.mubr.f32.gmra.mrb[4].mxu1 %v651_v56 }
 0x1a3   : > { %1488 = vmatprep.mubr.f32.mxu1 %v1437_v53 }
 0x1a6   : > { %v1441_v57 = vpop.f32.mrb[8].mxu0  ;;  %1489 = vmatmul.mubr.f32.gmra.mrb[6].mxu1 %v1438_v55 }
 0x1a7   : > { %v664_v58 = vpop.f32.mrb[9].mxu0 }
 0x1a8   : > { %v1442_v59 = vpop.f32.mrb[10].mxu0  ;;  %1491 = vmatprep.mubr.f32.mxu1 %v664_v58  ;;  %v1990_v58 = vmov (!%p1320_p13), 0.0|0.0  }
 0x1a9   : > { %v667_v60 = vpop.f32.mrb[11].mxu0  ;;  %1605 = vmatprep.subr.bf16.mxu0 (!%p1320_p13), %v1990_v58 }
 0x1aa   : > { %1492 = vmatmul.mubr.f32.gmra.mrb[8].mxu1 %v667_v60  ;;  %v971_v60 = vld [vmem:[%s2375_s7] sm:$0xff] (!%p1320_p13) }
 0x1ab   : > { %1494 = vmatprep.mubr.f32.mxu1 %v1441_v57 }
 0x1ae   : > { %v1445_v61 = vpop.f32.mrb[12].mxu0  ;;  %1495 = vmatmul.mubr.f32.gmra.mrb[10].mxu1 %v1442_v59  ;;  %v1992_v59 = vmov (!%p1320_p13), 0.0  }
 0x1af   : > { %v680_v62 = vpop.f32.mrb[13].mxu0  ;;  %1535 = vmatprep.mubr.msk.f32.mxu0 (!%p1320_p13), %vm1991_vm0, %v1992_v59 }
 0x1b0   : > { %v1446_v63 = vpop.f32.mrb[14].mxu0  ;;  %1497 = vmatprep.mubr.f32.mxu1 %v680_v62 }
 0x1b1   : > { %v683_v0 = vpop.f32.mrb[15].mxu0 }
 0x1b2   : > { %1498 = vmatmul.mubr.f32.gmra.mrb[12].mxu1 %v683_v0 }
 0x1b3   : > { %1500 = vmatprep.mubr.f32.mxu1 %v1445_v61  ;;  %v970_v61 = vld [vmem:[#allocation4] sm:$0xff] (!%p1320_p13) }
 0x1b6   : > { %1501 = vmatmul.mubr.f32.gmra.mrb[14].mxu1 %v1446_v63 }
 0x26d   : > { %v1481_v2 = vpop.f32.mrb[0].mxu1 }
 0x26e   : > { %v841_v3 = vadd.f32 %v1481_v2, %v1314_v1  ;;  %v835_v4 = vpop.f32.mrb[1].mxu1 }
 0x26f   : > { %v836_v5 = vadd.f32 %v1314_v1, %v835_v4 }
 0x270   : > { %v915_v6 = vmax.f32 %v841_v3, 0.0 }
 0x271   : > { %v914_v7 = vmax.f32 %v836_v5, 0.0  ;;  %v1484_v8 = vpop.f32.mrb[2].mxu1 }
 0x272   : > { %v851_v9 = vadd.f32 %v1484_v8, %v1314_v1  ;;  %v845_v10 = vpop.f32.mrb[3].mxu1 }
 0x273   : > { %v2278_v11 = vpack.c.bf16 %v915_v6, %v914_v7  ;;  %v846_v12 = vadd.f32 %v1314_v1, %v845_v10 }
 0x274   : > { %v917_v13 = vmax.f32 %v851_v9, 0.0 }
 0x275   : > { %958 = vst [vmem:[%s2280_s8] sm:$0xff] %v2278_v11  ;;  %v916_v14 = vmax.f32 %v846_v12, 0.0  ;;  %v1487_v15 = vpop.f32.mrb[4].mxu1  ;;  %1607 = vmatpush3.bf16.msra.mxu0 (!%p1320_p13), %v2278_v11 }
 0x276   : > { %v861_v16 = vadd.f32 %v1487_v15, %v1314_v1  ;;  %v855_v17 = vpop.f32.mrb[5].mxu1  ;;  %1608 = vmatprep.subr.bf16.mxu0 (!%p1320_p13), %v1990_v58 }
 0x277   : > { %v932_v18 = vpack.c.bf16 %v917_v13, %v916_v14  ;;  %v856_v19 = vadd.f32 %v1314_v1, %v855_v17 }
 0x278   : > { %v919_v20 = vmax.f32 %v861_v16, 0.0 }
 0x279   : > { %959 = vst [vmem:[%s2280_s8 + $0x8] sm:$0xff] %v932_v18  ;;  %v918_v21 = vmax.f32 %v856_v19, 0.0  ;;  %v1490_v22 = vpop.f32.mrb[6].mxu1  ;;  %1610 = vmatpush3.bf16.msra.mxu0 (!%p1320_p13), %v932_v18 }
 0x27a   : > { %v871_v23 = vadd.f32 %v1490_v22, %v1314_v1  ;;  %v865_v24 = vpop.f32.mrb[7].mxu1  ;;  %1611 = vmatprep.subr.bf16.mxu0 (!%p1320_p13), %v1990_v58 }
 0x27b   : > { %v933_v25 = vpack.c.bf16 %v919_v20, %v918_v21  ;;  %v866_v26 = vadd.f32 %v1314_v1, %v865_v24 }
 0x27c   : > { %v921_v27 = vmax.f32 %v871_v23, 0.0 }
 0x27d   : > { %960 = vst [vmem:[%s2280_s8 + $0x10] sm:$0xff] %v933_v25  ;;  %v920_v28 = vmax.f32 %v866_v26, 0.0  ;;  %v1493_v29 = vpop.f32.mrb[8].mxu1  ;;  %1613 = vmatpush3.bf16.msra.mxu0 (!%p1320_p13), %v933_v25 }
 0x27e   : > { %v881_v30 = vadd.f32 %v1493_v29, %v1314_v1  ;;  %v875_v31 = vpop.f32.mrb[9].mxu1  ;;  %1614 = vmatprep.subr.bf16.mxu0 (!%p1320_p13), %v1990_v58 }
 0x27f   : > { %v934_v32 = vpack.c.bf16 %v921_v27, %v920_v28  ;;  %v876_v33 = vadd.f32 %v1314_v1, %v875_v31 }
 0x280   : > { %v923_v34 = vmax.f32 %v881_v30, 0.0 }
 0x281   : > { %961 = vst [vmem:[%s2280_s8 + $0x18] sm:$0xff] %v934_v32  ;;  %v922_v35 = vmax.f32 %v876_v33, 0.0  ;;  %v1496_v36 = vpop.f32.mrb[10].mxu1  ;;  %1616 = vmatpush3.bf16.msra.mxu0 (!%p1320_p13), %v934_v32 }
 0x282   : > { %v891_v37 = vadd.f32 %v1496_v36, %v1314_v1  ;;  %v885_v38 = vpop.f32.mrb[11].mxu1  ;;  %1617 = vmatprep.subr.bf16.mxu0 (!%p1320_p13), %v1990_v58 }
 0x283   : > { %v935_v39 = vpack.c.bf16 %v923_v34, %v922_v35  ;;  %v886_v40 = vadd.f32 %v1314_v1, %v885_v38 }
 0x284   : > { %v925_v41 = vmax.f32 %v891_v37, 0.0 }
 0x285   : > { %962 = vst [vmem:[%s2280_s8 + $0x20] sm:$0xff] %v935_v39  ;;  %v924_v42 = vmax.f32 %v886_v40, 0.0  ;;  %v1499_v43 = vpop.f32.mrb[12].mxu1  ;;  %1619 = vmatpush3.bf16.msra.mxu0 (!%p1320_p13), %v935_v39 }
 0x286   : > { %v901_v44 = vadd.f32 %v1499_v43, %v1314_v1  ;;  %v895_v45 = vpop.f32.mrb[13].mxu1  ;;  %1620 = vmatprep.subr.bf16.mxu0 (!%p1320_p13), %v1990_v58 }
 0x287   : > { %v936_v46 = vpack.c.bf16 %v925_v41, %v924_v42  ;;  %v896_v47 = vadd.f32 %v1314_v1, %v895_v45 }
 0x288   : > { %v927_v48 = vmax.f32 %v901_v44, 0.0 }
 0x289   : > { %963 = vst [vmem:[%s2280_s8 + $0x28] sm:$0xff] %v936_v46  ;;  %v926_v49 = vmax.f32 %v896_v47, 0.0  ;;  %v1502_v50 = vpop.f32.mrb[14].mxu1  ;;  %1622 = vmatpush3.bf16.msra.mxu0 (!%p1320_p13), %v936_v46 }
 0x28a   : > { %v911_v51 = vadd.f32 %v1502_v50, %v1314_v1  ;;  %v905_v52 = vpop.f32.mrb[15].mxu1  ;;  %1623 = vmatprep.subr.bf16.mxu0 (!%p1320_p13), %v1990_v58 }
 0x28b   : > { %v937_v53 = vpack.c.bf16 %v927_v48, %v926_v49  ;;  %v906_v54 = vadd.f32 %v1314_v1, %v905_v52  ;;  %969 = sbr.rel (%p1320_p13) target bundleno = 875 (0x36b), region = 80 }
 0x28c   : > { %v929_v55 = vmax.f32 %v911_v51, 0.0 }
 0x28d   : > { %964 = vst [vmem:[%s2280_s8 + $0x30] sm:$0xff] %v937_v53  ;;  %v928_v56 = vmax.f32 %v906_v54, 0.0  ;;  %1625 = vmatpush3.bf16.msra.mxu0 (!%p1320_p13), %v937_v53 }
 0x28e   : > { %1626 = vmatprep.subr.bf16.mxu0 (!%p1320_p13), %v1990_v58 }
 0x28f   : > { %v938_v57 = vpack.c.bf16 %v929_v55, %v928_v56 }
 0x291   : > { %965 = vst [vmem:[%s2280_s8 + $0x38] sm:$0xff] %v938_v57  ;;  %1628 = vmatpush3.bf16.msra.mxu0 (!%p1320_p13), %v938_v57 }
 0x294   : > { %1536 = vmatmul.mubr.f32.vlgmr.msra.gmra.mrb[0].mxu0 %v971_v60 }
 0x367   : > { %v1038_v62 = vpop.f32.mrb[0].mxu0 }
 0x368   : > { %v1042_v63 = vadd.f32 %v1038_v62, %v970_v61  ;;  %v1537_v0 = vpop.f32.mrb[1].mxu0 }
 0x36a   : > { %1043 = vst [vmem:[#allocation4] sm:$0xff] %v1042_v63 }
 0x36b PF: > { %1047 = sbr.rel (!%p966_p1) target bundleno = 1124 (0x464), region = 84  ;;  %v1049_v1 = vld [vmem:[#allocation11] sm:$0xff] (%p966_p1)  ;;  %v1050_v2 = vld [vmem:[#allocation11 + $0x8] sm:$0xff] (%p966_p1)  ;;  %v1051_v3 = vld [vmem:[#allocation11 + $0x10] sm:$0xff] (%p966_p1)  ;;  %v1993_v4 = vmov (%p966_p1), 0.0|0.0   ;;  %vm1994_vm1 = vmmov (%p966_p1), 0  }
 0x36c   : > { %1629 = vmatprep.subr.bf16.mxu0 (%p966_p1), %v1993_v4  ;;  %v1630_v5 = vpack.c.bf16 (%p966_p1), %v1050_v2, %v1049_v1  ;;  %v1052_v6 = vld [vmem:[#allocation11 + $0x18] sm:$0xff] (%p966_p1)  ;;  %v1995_v7 = vmov (%p966_p1), 0.0   ;;  %v1053_v9 = vld [vmem:[#allocation11 + $0x20] sm:$0xff] (%p966_p1)  ;;  %v1054_v10 = vld [vmem:[#allocation11 + $0x28] sm:$0xff] (%p966_p1)  ;;  %s2376_s12 = sld [smem:[#allocation20_spill]] (%p966_p1) }
 0x36d   : > { %1570 = vmatprep.mubr.msk.f32.mxu0 (%p966_p1), %vm1994_vm1, %v1995_v7  ;;  %v1633_v8 = vpack.c.bf16 (%p966_p1), %v1052_v6, %v1051_v3  ;;  %v1636_v11 = vpack.c.bf16 (%p966_p1), %v1054_v10, %v1053_v9  ;;  %v1055_v12 = vld [vmem:[#allocation11 + $0x30] sm:$0xff] (%p966_p1)  ;;  %v1056_v13 = vld [vmem:[#allocation11 + $0x38] sm:$0xff] (%p966_p1)  ;;  %v1057_v15 = vld [vmem:[#allocation11 + $0x40] sm:$0xff] (%p966_p1) }
 0x36e   : > { %1631 = vmatpush3.bf16.msra.mxu0 (%p966_p1), %v1630_v5  ;;  %v1639_v14 = vpack.c.bf16 (%p966_p1), %v1056_v13, %v1055_v12  ;;  %v1058_v16 = vld [vmem:[#allocation11 + $0x48] sm:$0xff] (%p966_p1)  ;;  %v1059_v18 = vld [vmem:[#allocation11 + $0x50] sm:$0xff] (%p966_p1)  ;;  %v1060_v19 = vld [vmem:[#allocation11 + $0x58] sm:$0xff] (%p966_p1) }
 0x36f   : > { %1632 = vmatprep.subr.bf16.mxu0 (%p966_p1), %v1993_v4  ;;  %v1642_v17 = vpack.c.bf16 (%p966_p1), %v1058_v16, %v1057_v15  ;;  %v1645_v20 = vpack.c.bf16 (%p966_p1), %v1060_v19, %v1059_v18  ;;  %v1061_v21 = vld [vmem:[#allocation11 + $0x60] sm:$0xff] (%p966_p1)  ;;  %v1062_v22 = vld [vmem:[#allocation11 + $0x68] sm:$0xff] (%p966_p1)  ;;  %v1063_v24 = vld [vmem:[#allocation11 + $0x70] sm:$0xff] (%p966_p1) }
 0x370   : > { %v1648_v23 = vpack.c.bf16 (%p966_p1), %v1062_v22, %v1061_v21  ;;  %v1064_v25 = vld [vmem:[#allocation11 + $0x78] sm:$0xff] (%p966_p1) }
 0x371   : > { %v1651_v26 = vpack.c.bf16 (%p966_p1), %v1064_v25, %v1063_v24  ;;  %v1048_v27 = vld [vmem:[#allocation4] sm:$0xff] (%p966_p1) }
 0x372   : > { %1634 = vmatpush3.bf16.msra.mxu0 %v1633_v8  ;;  %v1322_v28 = vld [vmem:[%s2376_s12] ss:$0 sm:$0xff] }
 0x373   : > { %1635 = vmatprep.subr.bf16.mxu0 %v1993_v4 }
 0x376   : > { %1637 = vmatpush3.bf16.msra.mxu0 %v1636_v11 }
 0x377   : > { %1638 = vmatprep.subr.bf16.mxu0 %v1993_v4 }
 0x37a   : > { %1640 = vmatpush3.bf16.msra.mxu0 %v1639_v14 }
 0x37b   : > { %1641 = vmatprep.subr.bf16.mxu0 %v1993_v4 }
 0x37e   : > { %1643 = vmatpush3.bf16.msra.mxu0 %v1642_v17 }
 0x37f   : > { %1644 = vmatprep.subr.bf16.mxu0 %v1993_v4 }
 0x382   : > { %1646 = vmatpush3.bf16.msra.mxu0 %v1645_v20 }
 0x383   : > { %1647 = vmatprep.subr.bf16.mxu0 %v1993_v4 }
 0x386   : > { %1649 = vmatpush3.bf16.msra.mxu0 %v1648_v23 }
 0x387   : > { %1650 = vmatprep.subr.bf16.mxu0 %v1993_v4 }
 0x38a   : > { %1652 = vmatpush3.bf16.msra.mxu0 %v1651_v26 }
 0x38d   : > { %1571 = vmatmul.mubr.f32.vlgmr.msra.gmra.mrb[0].mxu0 %v1048_v27 }
 0x460   : > { %v1138_v29 = vpop.f32.mrb[0].mxu0 }
 0x461   : > { %v1139_v30 = vadd.f32 %v1322_v28, %v1138_v29  ;;  %v1572_v31 = vpop.f32.mrb[1].mxu0 }
 0x463   : > { %1142 = vst [vmem:[#allocation12] sm:$0xff] %v1139_v30 }
 0x464 PF: > { %p1692_p4 = scmp.eq.s32.totalorder %s2066_s30, 2  ;;  %s1996_s4 = smov [#allocation12]  }
 0x465   : > { %s1150_s22 = sshll.u32 %s1996_s4, 4  ;;  %s1151_s22 = int_to_ptr.vmem [resolvable:$true] %s1150_s22 }
 0x466   : > { %s1887_s6 = scalar_lea.vmem %s1151_s22, 128  ;;  %p1894_p9 = scmp.lt.s32.totalorder %s1151_s22, %s1151_s22 }
 0x467   : > { %p1888_p5 = scmp.ne.s32.totalorder %s1151_s22, %s1887_s6  ;;  %p1895_p11 = scmp.lt.s32.totalorder %s1887_s6, %s1887_s6 }
 0x469   : > { %p1889_p6 = pnand %p1888_p5, %p1692_p4  ;;  %p1896_p0 = por %p1895_p11, %p1894_p9 }
 0x46b   : > { %p1890_p7 = pneg %p1889_p6 }
 0x46d   : > { %p1897_p10 = pnand %p1896_p0, %p1890_p7 }
 0x46f   : > { %1900 = shalt.err (!%p1897_p10)
}
 0x470   : > { %s2377_s13 = sld [smem:[#allocation21_spill]] }
 0x476   : > { %s1901_s23 = scalar_lea.hbm %s2377_s13, 128 }
 0x477   : > { %p1902_p3 = scmp.ne.s32.totalorder %s2377_s13, %s1901_s23  ;;  %p1907_p2 = scmp.lt.u32.totalorder %s1901_s23, %s2377_s13 }
 0x479   : > { %p1903_p12 = pnand %p1902_p3, %p1692_p4 }
 0x47b   : > { %p1904_p1 = pneg %p1903_p12 }
 0x47d   : > { %p1909_p8 = pnand %p1907_p2, %p1904_p1 }
 0x47f   : > { %1912 = shalt.err (!%p1909_p8)
}
 0x480   : > { %1668 = dma.vmem_to_hbm [thread:$0]  (%p1692_p4), %s1151_s22, 128, %s2377_s13, [#allocation7]  }
 0x481   : > { %1954 = dma.done.wait (%p1692_p4), [#allocation7], 128  }
 0x482   : > { %1956 = vsyncadd (%p1692_p4), [#allocation7], 4294967168 }
 0x483 PF: > { %s20_s29 = sadd.s32 1, %s1979_s29   ;;  %s2378_s24 = smov %s1963_s25 }
 0x484   : > { %p17_p13 = scmp.ge.s32.totalorder %s20_s29, 5   ;;  %s2379_s25 = smov %s1967_s26 }
 0x485   : > { %s2380_s26 = smov %s2178_s20  ;;  %s2381_s27 = smov %s1975_s28 }
 0x486   : > { %s2382_s28 = smov %s2384_s11  ;;  %19 = sbr.rel (!%p17_p13) target bundleno = 10 (0xa), region = 125 }
 0x48d   :  { %1163 = vsyncpa [#allocation6], 1 }
 0x48e   :  { %1165 = vsyncpa [#allocation6 + $0x1], 1 }
 0x48f   :  { %1166 = vsyncpa [#allocation9], 1 }
 0x490   :  { %1167 = vsyncpa [#allocation7], 1 }
 0x491   :  { %1169 = vsyncpa [#allocation7 + $0x1], 1 }

</bundles_post_ra>
